<compile_context>
chip_gen: v6e
topology: v6e:2x2x1
jax: 0.10.0
libtpu: 0.0.40
codegen_flags: <defaults>
</compile_context>

<pallas_src>
import functools

import jax
import jax.numpy as jnp
from jax.experimental import pallas as pl
from jax.experimental.pallas import tpu as pltpu


# ---------------------------------------------------------------------------
# Kernel 1: fused q/k/v projections  (one launch, grid over batch)
#   q_out = x_q @ Wq + bq ; k_out = x_k @ Wk + bk ; v_out = x_v @ Wv + bv
# Output columns are already head-major ([head0 | head1 | ...]), matching the
# PyTorch .view(sz_b, len, n_head, d) split, so downstream head slicing is a
# static column slice -- no transposes needed.
# ---------------------------------------------------------------------------
def _qkv_proj_kernel(xq_ref, xk_ref, xv_ref,
                     wq_ref, bq_ref, wk_ref, bk_ref, wv_ref, bv_ref,
                     qo_ref, ko_ref, vo_ref):
    q = jnp.dot(xq_ref[0], wq_ref[...], preferred_element_type=jnp.float32)
    k = jnp.dot(xk_ref[0], wk_ref[...], preferred_element_type=jnp.float32)
    v = jnp.dot(xv_ref[0], wv_ref[...], preferred_element_type=jnp.float32)
    qo_ref[0] = (q + bq_ref[...].astype(jnp.float32)).astype(qo_ref.dtype)
    ko_ref[0] = (k + bk_ref[...].astype(jnp.float32)).astype(ko_ref.dtype)
    vo_ref[0] = (v + bv_ref[...].astype(jnp.float32)).astype(vo_ref.dtype)


def qkv_projection(q, k, v, wq, bq, wk, bk, wv, bv):
    B, Lq, d_model = q.shape
    _, Lk, _ = k.shape
    _, Lv, _ = v.shape
    nq, nk, nv = wq.shape[1], wk.shape[1], wv.shape[1]

    def const(shape):
        return pl.BlockSpec(shape, lambda b: (0, 0))

    return pl.pallas_call(
        _qkv_proj_kernel,
        grid=(B,),
        in_specs=[
            pl.BlockSpec((1, Lq, d_model), lambda b: (b, 0, 0)),
            pl.BlockSpec((1, Lk, d_model), lambda b: (b, 0, 0)),
            pl.BlockSpec((1, Lv, d_model), lambda b: (b, 0, 0)),
            const((d_model, nq)), const((1, nq)),
            const((d_model, nk)), const((1, nk)),
            const((d_model, nv)), const((1, nv)),
        ],
        out_specs=[
            pl.BlockSpec((1, Lq, nq), lambda b: (b, 0, 0)),
            pl.BlockSpec((1, Lk, nk), lambda b: (b, 0, 0)),
            pl.BlockSpec((1, Lv, nv), lambda b: (b, 0, 0)),
        ],
        out_shape=[
            jax.ShapeDtypeStruct((B, Lq, nq), q.dtype),
            jax.ShapeDtypeStruct((B, Lk, nk), k.dtype),
            jax.ShapeDtypeStruct((B, Lv, nv), v.dtype),
        ],
        compiler_params=pltpu.CompilerParams(dimension_semantics=("parallel",)),
    )(q, k, v, wq, bq, wk, bk, wv, bv)


# ---------------------------------------------------------------------------
# Kernel 2: scaled dot product attention, all heads of one batch per grid step.
#   - head columns sliced statically out of the head-major projection layout
#   - 1/temperature folded into q; softmax denom via approx reciprocal (EUP)
#   - context written as a single (Lq, n_head*d_v) slab (lane-denser store)
#   - attn written per head into a (H, B, Lq, Lk) slab; reshaped to the
#     PyTorch (H*B, Lq, Lk) layout by a contiguous (free) reshape outside.
# ---------------------------------------------------------------------------
def _attention_kernel(q_ref, k_ref, v_ref, *rest,
                      n_head, d_k, d_v, scale, has_mask):
    if has_mask:
        m_ref, o_ref, a_ref = rest
        masked = m_ref[0] > 0.0                       # (Lq, Lk) bool
    else:
        o_ref, a_ref = rest

    q = q_ref[0]                                      # (Lq, H*d_k), native dtype
    k = k_ref[0]                                      # (Lk, H*d_k)
    v = v_ref[0]                                      # (Lk, H*d_v)

    ctx_heads = []
    for h in range(n_head):
        qh = q[:, h * d_k:(h + 1) * d_k] * scale      # fold 1/temperature into q
        kh = k[:, h * d_k:(h + 1) * d_k]
        vh = v[:, h * d_v:(h + 1) * d_v]
        # QK^T without an explicit transpose: contract on last dims of both.
        s = jax.lax.dot_general(
            qh, kh, (((1,), (1,)), ((), ())),
            preferred_element_type=jnp.float32)       # (Lq, Lk) f32
        if has_mask:
            s = jnp.where(masked, -jnp.inf, s)
        # numerically-stable softmax in f32 (v5e-safe elementwise path)
        s = s - jnp.max(s, axis=-1, keepdims=True)
        e = jnp.exp(s)
        denom = jnp.sum(e, axis=-1, keepdims=True)
        p = e * pl.reciprocal(denom, approx=True)
        a_ref[h, 0] = p.astype(a_ref.dtype)
        ctx_heads.append(
            jnp.dot(p.astype(vh.dtype), vh, preferred_element_type=jnp.float32))

    # single store of the full head-merged context slab
    o_ref[0] = jnp.concatenate(ctx_heads, axis=-1).astype(o_ref.dtype)


def attention(qp, kp, vp, n_head, d_k, d_v, scale, mask=None,
              attn_dtype=jnp.float32):
    B, Lq, _ = qp.shape
    _, Lk, _ = kp.shape
    has_mask = mask is not None

    kernel = functools.partial(
        _attention_kernel, n_head=n_head, d_k=d_k, d_v=d_v,
        scale=scale, has_mask=has_mask)

    in_specs = [
        pl.BlockSpec((1, Lq, n_head * d_k), lambda b: (b, 0, 0)),
        pl.BlockSpec((1, Lk, n_head * d_k), lambda b: (b, 0, 0)),
        pl.BlockSpec((1, Lk, n_head * d_v), lambda b: (b, 0, 0)),
    ]
    operands = [qp, kp, vp]
    if has_mask:
        in_specs.append(pl.BlockSpec((1, Lq, Lk), lambda b: (b, 0, 0)))
        operands.append(mask.astype(jnp.float32))

    ctx, attn = pl.pallas_call(
        kernel,
        grid=(B,),
        in_specs=in_specs,
        out_specs=[
            pl.BlockSpec((1, Lq, n_head * d_v), lambda b: (b, 0, 0)),
            pl.BlockSpec((n_head, 1, Lq, Lk), lambda b: (0, b, 0, 0)),
        ],
        out_shape=[
            jax.ShapeDtypeStruct((B, Lq, n_head * d_v), qp.dtype),
            jax.ShapeDtypeStruct((n_head, B, Lq, Lk), attn_dtype),
        ],
        compiler_params=pltpu.CompilerParams(dimension_semantics=("parallel",)),
    )(*operands)
    return ctx, attn


# ---------------------------------------------------------------------------
# Kernel 3: fused fc matmul + residual add + LayerNorm (eps = 1e-5)
# ---------------------------------------------------------------------------
def _fc_add_ln_kernel(x_ref, r_ref, w_ref, b_ref, g_ref, be_ref, o_ref, *, eps):
    y = jnp.dot(x_ref[0], w_ref[...], preferred_element_type=jnp.float32)
    y = y + b_ref[...].astype(jnp.float32) + r_ref[0].astype(jnp.float32)
    mean = jnp.mean(y, axis=-1, keepdims=True)
    var = jnp.mean(jnp.square(y - mean), axis=-1, keepdims=True)
    yn = (y - mean) * jax.lax.rsqrt(var + eps)
    o_ref[0] = (yn * g_ref[...].astype(jnp.float32)
                + be_ref[...].astype(jnp.float32)).astype(o_ref.dtype)


def fc_residual_layernorm(ctx, residual, w, b, gamma, beta, eps=1e-5):
    B, Lq, dctx = ctx.shape
    d_model = w.shape[1]
    kernel = functools.partial(_fc_add_ln_kernel, eps=eps)

    def const(shape):
        return pl.BlockSpec(shape, lambda b: (0, 0))

    return pl.pallas_call(
        kernel,
        grid=(B,),
        in_specs=[
            pl.BlockSpec((1, Lq, dctx), lambda b: (b, 0, 0)),
            pl.BlockSpec((1, Lq, d_model), lambda b: (b, 0, 0)),
            const((dctx, d_model)),
            const((1, d_model)),
            const((1, d_model)),
            const((1, d_model)),
        ],
        out_specs=pl.BlockSpec((1, Lq, d_model), lambda b: (b, 0, 0)),
        out_shape=jax.ShapeDtypeStruct((B, Lq, d_model), residual.dtype),
        compiler_params=pltpu.CompilerParams(dimension_semantics=("parallel",)),
    )(ctx, residual, w, b, gamma, beta)


# ---------------------------------------------------------------------------
# Parameter init (deterministic, PyTorch-Linear-style uniform fan-in init)
# ---------------------------------------------------------------------------
def init_params(key, n_head, d_model, d_k, d_v):
    ks = jax.random.split(key, 8)

    def lin(kw, kb, fan_in, fan_out):
        bound = 1.0 / (fan_in ** 0.5)
        w = jax.random.uniform(kw, (fan_in, fan_out), jnp.float32, -bound, bound)
        b = jax.random.uniform(kb, (1, fan_out), jnp.float32, -bound, bound)
        return w, b

    return {
        "w_qs": lin(ks[0], ks[1], d_model, n_head * d_k),
        "w_ks": lin(ks[2], ks[3], d_model, n_head * d_k),
        "w_vs": lin(ks[4], ks[5], d_model, n_head * d_v),
        "fc":   lin(ks[6], ks[7], n_head * d_v, d_model),
        "ln":   (jnp.ones((1, d_model), jnp.float32),
                 jnp.zeros((1, d_model), jnp.float32)),
    }


# ---------------------------------------------------------------------------
# Full MultiHeadAttention forward (eval mode; dropout == identity)
# ---------------------------------------------------------------------------
def multi_head_attention(params, q, k, v, n_head, d_k, d_v, mask=None,
                         attn_dtype=jnp.float32):
    sz_b, len_q, d_model = q.shape
    _, len_k, _ = k.shape

    wq, bq = params["w_qs"]
    wk, bk = params["w_ks"]
    wv, bv = params["w_vs"]

    # 1) fused q/k/v projections (head-major column layout, no transposes)
    qp, kp, vp = qkv_projection(q, k, v, wq, bq, wk, bk, wv, bv)

    # 2) attention, all heads of one batch per grid step
    scale = 1.0 / (float(d_k) ** 0.5)
    ctx, attn4 = attention(qp, kp, vp, n_head, d_k, d_v, scale,
                           mask=mask, attn_dtype=attn_dtype)
    # (H, B, Lq, Lk) -> (H*B, Lq, Lk): contiguous leading-dim merge (cheap)
    attn = attn4.reshape(n_head * sz_b, len_q, len_k)

    # 3) fc + dropout(identity in eval) + residual + LayerNorm, fused
    w_fc, b_fc = params["fc"]
    gamma, beta = params["ln"]
    out = fc_residual_layernorm(ctx, q, w_fc, b_fc, gamma, beta)
    return out, attn


# ---------------------------------------------------------------------------
# Pure-JAX reference (mirrors the PyTorch module) for correctness checks
# ---------------------------------------------------------------------------
def reference_mha(params, q, k, v, n_head, d_k, d_v, mask=None):
    sz_b, len_q, d_model = q.shape

    def proj(x, wb, d):
        w, b = wb
        B, L = x.shape[:2]
        y = (x @ w + b[0]).reshape(B, L, n_head, d)
        return jnp.transpose(y, (2, 0, 1, 3)).reshape(n_head * B, L, d)

    qh = proj(q, params["w_qs"], d_k)
    kh = proj(k, params["w_ks"], d_k)
    vh = proj(v, params["w_vs"], d_v)
    s = jnp.einsum("nqd,nkd->nqk", qh, kh) / (float(d_k) ** 0.5)
    if mask is not None:
        s = jnp.where(jnp.tile(mask, (n_head, 1, 1)), -jnp.inf, s)
    attn = jax.nn.softmax(s, axis=-1)
    out = jnp.einsum("nqk,nkd->nqd", attn, vh)
    out = out.reshape(n_head, sz_b, len_q, d_v)
    out = jnp.transpose(out, (1, 2, 0, 3)).reshape(sz_b, len_q, n_head * d_v)
    w, b = params["fc"]
    out = out @ w + b[0] + q
    mean = out.mean(-1, keepdims=True)
    var = ((out - mean) ** 2).mean(-1, keepdims=True)
    g, be = params["ln"]
    out = (out - mean) / jnp.sqrt(var + 1e-5) * g[0] + be[0]
    return out, attn


# ---------------------------------------------------------------------------
if __name__ == "__main__":
    key = jax.random.PRNGKey(0)
    n_head, d_model, d_k, d_v = 2, 32, 16, 16
    B, L = 2, 8

    kp_, kq_, kk_, kv_ = jax.random.split(key, 4)
    params = init_params(kp_, n_head, d_model, d_k, d_v)
    q = jax.random.normal(kq_, (B, L, d_model), jnp.float32)
    k = jax.random.normal(kk_, (B, L, d_model), jnp.float32)
    v = jax.random.normal(kv_, (B, L, d_model), jnp.float32)

    # ---- unmasked path ----
    out, attn = multi_head_attention(params, q, k, v, n_head, d_k, d_v)
    jax.block_until_ready((out, attn))

    assert out.shape == (B, L, d_model), out.shape
    assert attn.shape == (n_head * B, L, L), attn.shape
    assert bool(jnp.all(jnp.isfinite(out))) and bool(jnp.all(jnp.isfinite(attn)))
    # softmax rows sum to ~1 (approx reciprocal -> slightly looser tolerance)
    assert bool(jnp.allclose(jnp.sum(attn, axis=-1), 1.0, atol=5e-3))

    ref_out, ref_attn = reference_mha(params, q, k, v, n_head, d_k, d_v)
    assert bool(jnp.allclose(out, ref_out, rtol=2e-2, atol=2e-2))
    assert bool(jnp.allclose(attn, ref_attn, rtol=2e-2, atol=2e-2))

    # ---- masked path (pad-mask on the last 2 key positions of batch 1) ----
    key_pos = jnp.arange(L)
    mask = jnp.broadcast_to(key_pos[None, None, :] >= L - 2, (B, L, L))
    mask = mask & (jnp.arange(B)[:, None, None] == 1)

    out_m, attn_m = multi_head_attention(params, q, k, v, n_head, d_k, d_v,
                                         mask=mask)
    jax.block_until_ready((out_m, attn_m))
    ref_out_m, ref_attn_m = reference_mha(params, q, k, v, n_head, d_k, d_v,
                                          mask=mask)
    assert bool(jnp.all(jnp.isfinite(out_m))) and bool(jnp.all(jnp.isfinite(attn_m)))
    assert bool(jnp.allclose(out_m, ref_out_m, rtol=2e-2, atol=2e-2))
    assert bool(jnp.allclose(attn_m, ref_attn_m, rtol=2e-2, atol=2e-2))
    # masked key positions must get ~zero probability
    assert bool(jnp.max(jnp.abs(attn_m[:, :, L - 2:] *
                                jnp.tile(mask, (n_head, 1, 1))[:, :, L - 2:])) < 1e-6)

    print("KERNEL_OK")
</pallas_src>

<mosaic_0001>
module attributes {stable_mosaic.version = 11 : i64} {
  func.func @_qkv_proj_kernel(%arg0: i32, %arg1: memref<1x8x32xf32, #tpu.memory_space<vmem>>, %arg2: memref<1x8x32xf32, #tpu.memory_space<vmem>>, %arg3: memref<1x8x32xf32, #tpu.memory_space<vmem>>, %arg4: memref<32x32xf32, #tpu.memory_space<vmem>>, %arg5: memref<1x32xf32, #tpu.memory_space<vmem>>, %arg6: memref<32x32xf32, #tpu.memory_space<vmem>>, %arg7: memref<1x32xf32, #tpu.memory_space<vmem>>, %arg8: memref<32x32xf32, #tpu.memory_space<vmem>>, %arg9: memref<1x32xf32, #tpu.memory_space<vmem>>, %arg10: memref<1x8x32xf32, #tpu.memory_space<vmem>>, %arg11: memref<1x8x32xf32, #tpu.memory_space<vmem>>, %arg12: memref<1x8x32xf32, #tpu.memory_space<vmem>>) attributes {dimension_semantics = [#tpu.dimension_semantics<parallel>], iteration_bounds = array<i64: 2>, scalar_prefetch = 0 : i64, scratch_operands = 0 : i64, tpu.core_type = #tpu.core_type<tc>, window_params = [{transform_indices = @transform_0, window_bounds = array<i64: 1, 8, 32>}, {transform_indices = @transform_1, window_bounds = array<i64: 1, 8, 32>}, {transform_indices = @transform_2, window_bounds = array<i64: 1, 8, 32>}, {pipeline_mode = #tpu.pipeline_mode<synchronous>, transform_indices = @transform_3, window_bounds = array<i64: 32, 32>}, {pipeline_mode = #tpu.pipeline_mode<synchronous>, transform_indices = @transform_4, window_bounds = array<i64: 1, 32>}, {pipeline_mode = #tpu.pipeline_mode<synchronous>, transform_indices = @transform_5, window_bounds = array<i64: 32, 32>}, {pipeline_mode = #tpu.pipeline_mode<synchronous>, transform_indices = @transform_6, window_bounds = array<i64: 1, 32>}, {pipeline_mode = #tpu.pipeline_mode<synchronous>, transform_indices = @transform_7, window_bounds = array<i64: 32, 32>}, {pipeline_mode = #tpu.pipeline_mode<synchronous>, transform_indices = @transform_8, window_bounds = array<i64: 1, 32>}, {transform_indices = @transform_9, window_bounds = array<i64: 1, 8, 32>}, {transform_indices = @transform_10, window_bounds = array<i64: 1, 8, 32>}, {transform_indices = @transform_11, window_bounds = array<i64: 1, 8, 32>}]} {
    %c0 = arith.constant 0 : index
    %c0_0 = arith.constant 0 : index
    %c0_1 = arith.constant 0 : index
    %0 = vector.load %arg1[%c0, %c0_0, %c0_1] : memref<1x8x32xf32, #tpu.memory_space<vmem>>, vector<1x8x32xf32>
    %1 = vector.shape_cast %0 : vector<1x8x32xf32> to vector<8x32xf32>
    %c0_2 = arith.constant 0 : index
    %c0_3 = arith.constant 0 : index
    %2 = vector.load %arg4[%c0_2, %c0_3] : memref<32x32xf32, #tpu.memory_space<vmem>>, vector<32x32xf32>
    %cst = arith.constant dense<0.000000e+00> : vector<8x32xf32>
    %3 = tpu.matmul %1, %2, %cst {dimension_numbers = #tpu.dot_dimension_numbers<[1], [0], [0], [1], [0, 0, 1, 1], [], []>} : vector<8x32xf32>, vector<32x32xf32>, vector<8x32xf32> -> vector<8x32xf32>
    %c0_4 = arith.constant 0 : index
    %c0_5 = arith.constant 0 : index
    %c0_6 = arith.constant 0 : index
    %4 = vector.load %arg2[%c0_4, %c0_5, %c0_6] : memref<1x8x32xf32, #tpu.memory_space<vmem>>, vector<1x8x32xf32>
    %5 = vector.shape_cast %4 : vector<1x8x32xf32> to vector<8x32xf32>
    %c0_7 = arith.constant 0 : index
    %c0_8 = arith.constant 0 : index
    %6 = vector.load %arg6[%c0_7, %c0_8] : memref<32x32xf32, #tpu.memory_space<vmem>>, vector<32x32xf32>
    %cst_9 = arith.constant dense<0.000000e+00> : vector<8x32xf32>
    %7 = tpu.matmul %5, %6, %cst_9 {dimension_numbers = #tpu.dot_dimension_numbers<[1], [0], [0], [1], [0, 0, 1, 1], [], []>} : vector<8x32xf32>, vector<32x32xf32>, vector<8x32xf32> -> vector<8x32xf32>
    %c0_10 = arith.constant 0 : index
    %c0_11 = arith.constant 0 : index
    %c0_12 = arith.constant 0 : index
    %8 = vector.load %arg3[%c0_10, %c0_11, %c0_12] : memref<1x8x32xf32, #tpu.memory_space<vmem>>, vector<1x8x32xf32>
    %9 = vector.shape_cast %8 : vector<1x8x32xf32> to vector<8x32xf32>
    %c0_13 = arith.constant 0 : index
    %c0_14 = arith.constant 0 : index
    %10 = vector.load %arg8[%c0_13, %c0_14] : memref<32x32xf32, #tpu.memory_space<vmem>>, vector<32x32xf32>
    %cst_15 = arith.constant dense<0.000000e+00> : vector<8x32xf32>
    %11 = tpu.matmul %9, %10, %cst_15 {dimension_numbers = #tpu.dot_dimension_numbers<[1], [0], [0], [1], [0, 0, 1, 1], [], []>} : vector<8x32xf32>, vector<32x32xf32>, vector<8x32xf32> -> vector<8x32xf32>
    %c0_16 = arith.constant 0 : index
    %c0_17 = arith.constant 0 : index
    %12 = vector.load %arg5[%c0_16, %c0_17] : memref<1x32xf32, #tpu.memory_space<vmem>>, vector<1x32xf32>
    %13 = vector.broadcast %12 : vector<1x32xf32> to vector<8x32xf32>
    %14 = arith.addf %3, %13 : vector<8x32xf32>
    %c0_18 = arith.constant 0 : index
    %c0_19 = arith.constant 0 : index
    %c0_20 = arith.constant 0 : index
    %15 = vector.load %arg10[%c0_18, %c0_19, %c0_20] : memref<1x8x32xf32, #tpu.memory_space<vmem>>, vector<1x8x32xf32>
    %16 = vector.shape_cast %15 : vector<1x8x32xf32> to vector<8x32xf32>
    %17 = vector.shape_cast %14 : vector<8x32xf32> to vector<1x8x32xf32>
    tpu.vector_store %arg10[%c0_18, %c0_19, %c0_20], %17 {strides = array<i32>} : memref<1x8x32xf32, #tpu.memory_space<vmem>>, vector<1x8x32xf32>,
    %c0_21 = arith.constant 0 : index
    %c0_22 = arith.constant 0 : index
    %18 = vector.load %arg7[%c0_21, %c0_22] : memref<1x32xf32, #tpu.memory_space<vmem>>, vector<1x32xf32>
    %19 = vector.broadcast %18 : vector<1x32xf32> to vector<8x32xf32>
    %20 = arith.addf %7, %19 : vector<8x32xf32>
    %c0_23 = arith.constant 0 : index
    %c0_24 = arith.constant 0 : index
    %c0_25 = arith.constant 0 : index
    %21 = vector.load %arg11[%c0_23, %c0_24, %c0_25] : memref<1x8x32xf32, #tpu.memory_space<vmem>>, vector<1x8x32xf32>
    %22 = vector.shape_cast %21 : vector<1x8x32xf32> to vector<8x32xf32>
    %23 = vector.shape_cast %20 : vector<8x32xf32> to vector<1x8x32xf32>
    tpu.vector_store %arg11[%c0_23, %c0_24, %c0_25], %23 {strides = array<i32>} : memref<1x8x32xf32, #tpu.memory_space<vmem>>, vector<1x8x32xf32>,
    %c0_26 = arith.constant 0 : index
    %c0_27 = arith.constant 0 : index
    %24 = vector.load %arg9[%c0_26, %c0_27] : memref<1x32xf32, #tpu.memory_space<vmem>>, vector<1x32xf32>
    %25 = vector.broadcast %24 : vector<1x32xf32> to vector<8x32xf32>
    %26 = arith.addf %11, %25 : vector<8x32xf32>
    %c0_28 = arith.constant 0 : index
    %c0_29 = arith.constant 0 : index
    %c0_30 = arith.constant 0 : index
    %27 = vector.load %arg12[%c0_28, %c0_29, %c0_30] : memref<1x8x32xf32, #tpu.memory_space<vmem>>, vector<1x8x32xf32>
    %28 = vector.shape_cast %27 : vector<1x8x32xf32> to vector<8x32xf32>
    %29 = vector.shape_cast %26 : vector<8x32xf32> to vector<1x8x32xf32>
    tpu.vector_store %arg12[%c0_28, %c0_29, %c0_30], %29 {strides = array<i32>} : memref<1x8x32xf32, #tpu.memory_space<vmem>>, vector<1x8x32xf32>,
    return
  }
  func.func @transform_0(%arg0: i32) -> (i32, i32, i32) {
    %c0_i32 = arith.constant 0 : i32
    %c0_i32_0 = arith.constant 0 : i32
    %c0_i32_1 = arith.constant 0 : i32
    return %arg0, %c0_i32, %c0_i32_0 : i32, i32, i32
  }
  func.func @transform_1(%arg0: i32) -> (i32, i32, i32) {
    %c0_i32 = arith.constant 0 : i32
    %c0_i32_0 = arith.constant 0 : i32
    %c0_i32_1 = arith.constant 0 : i32
    return %arg0, %c0_i32, %c0_i32_0 : i32, i32, i32
  }
  func.func @transform_2(%arg0: i32) -> (i32, i32, i32) {
    %c0_i32 = arith.constant 0 : i32
    %c0_i32_0 = arith.constant 0 : i32
    %c0_i32_1 = arith.constant 0 : i32
    return %arg0, %c0_i32, %c0_i32_0 : i32, i32, i32
  }
  func.func @transform_3(%arg0: i32) -> (i32, i32) {
    %c0_i32 = arith.constant 0 : i32
    %c0_i32_0 = arith.constant 0 : i32
    %c0_i32_1 = arith.constant 0 : i32
    return %c0_i32, %c0_i32_0 : i32, i32
  }
  func.func @transform_4(%arg0: i32) -> (i32, i32) {
    %c0_i32 = arith.constant 0 : i32
    %c0_i32_0 = arith.constant 0 : i32
    %c0_i32_1 = arith.constant 0 : i32
    return %c0_i32, %c0_i32_0 : i32, i32
  }
  func.func @transform_5(%arg0: i32) -> (i32, i32) {
    %c0_i32 = arith.constant 0 : i32
    %c0_i32_0 = arith.constant 0 : i32
    %c0_i32_1 = arith.constant 0 : i32
    return %c0_i32, %c0_i32_0 : i32, i32
  }
  func.func @transform_6(%arg0: i32) -> (i32, i32) {
    %c0_i32 = arith.constant 0 : i32
    %c0_i32_0 = arith.constant 0 : i32
    %c0_i32_1 = arith.constant 0 : i32
    return %c0_i32, %c0_i32_0 : i32, i32
  }
  func.func @transform_7(%arg0: i32) -> (i32, i32) {
    %c0_i32 = arith.constant 0 : i32
    %c0_i32_0 = arith.constant 0 : i32
    %c0_i32_1 = arith.constant 0 : i32
    return %c0_i32, %c0_i32_0 : i32, i32
  }
  func.func @transform_8(%arg0: i32) -> (i32, i32) {
    %c0_i32 = arith.constant 0 : i32
    %c0_i32_0 = arith.constant 0 : i32
    %c0_i32_1 = arith.constant 0 : i32
    return %c0_i32, %c0_i32_0 : i32, i32
  }
  func.func @transform_9(%arg0: i32) -> (i32, i32, i32) {
    %c0_i32 = arith.constant 0 : i32
    %c0_i32_0 = arith.constant 0 : i32
    %c0_i32_1 = arith.constant 0 : i32
    return %arg0, %c0_i32, %c0_i32_0 : i32, i32, i32
  }
  func.func @transform_10(%arg0: i32) -> (i32, i32, i32) {
    %c0_i32 = arith.constant 0 : i32
    %c0_i32_0 = arith.constant 0 : i32
    %c0_i32_1 = arith.constant 0 : i32
    return %arg0, %c0_i32, %c0_i32_0 : i32, i32, i32
  }
  func.func @transform_11(%arg0: i32) -> (i32, i32, i32) {
    %c0_i32 = arith.constant 0 : i32
    %c0_i32_0 = arith.constant 0 : i32
    %c0_i32_1 = arith.constant 0 : i32
    return %arg0, %c0_i32, %c0_i32_0 : i32, i32, i32
  }
}

</mosaic_0001>

<bundles_post_ra>
// kernel: tpu_custom_call.1
= control target key start
LH: loop header
LB: loop body
LE: loop exit
PB: predicated region body
PF: predicated region fallthrough
CT: control target
= control target key end

     0   :  { %s1975_s0 = inlined_call_operand.hbm [shape: f32[2,8,32], index: 0, kind: input, shape index: {}]   ;;  %s1976_s1 = inlined_call_operand.hbm [shape: f32[2,8,32], index: 1, kind: input, shape index: {}]   ;;  %s1977_s2 = inlined_call_operand.hbm [shape: f32[2,8,32], index: 2, kind: input, shape index: {}]   ;;  %s1978_s3 = inlined_call_operand.hbm [shape: f32[32,32], index: 3, kind: input, shape index: {}]   ;;  %s1979_s4 = inlined_call_operand.vmem [shape: f32[1,32], index: 4, kind: input, shape index: {}]   ;;  %s1980_s5 = inlined_call_operand.hbm [shape: f32[32,32], index: 5, kind: input, shape index: {}]   ;;  %s1981_s6 = inlined_call_operand.vmem [shape: f32[1,32], index: 6, kind: input, shape index: {}]   ;;  %s1982_s7 = inlined_call_operand.hbm [shape: f32[32,32], index: 7, kind: input, shape index: {}]   ;;  %s1983_s8 = inlined_call_operand.vmem [shape: f32[1,32], index: 8, kind: input, shape index: {}]   ;;  %s1984_s9 = inlined_call_operand.hbm [shape: f32[2,8,32], index: 9, kind: output, shape index: {0}]   ;;  %s1985_s10 = inlined_call_operand.hbm [shape: f32[2,8,32], index: 10, kind: output, shape index: {1}]   ;;  %s1986_s11 = inlined_call_operand.hbm [shape: f32[2,8,32], index: 11, kind: output, shape index: {2}]  }
   0x1   :  { %2009 = sst [smem:[#allocation28_spill]] %s1976_s1 }
   0x2   :  { %2010 = sst [smem:[#allocation29_spill]] %s1978_s3 }
   0x3   :  { %2011 = sst [smem:[#allocation30_spill]] %s1983_s8 }
   0x4   :  { %2012 = sst [smem:[#allocation31_spill]] %s1984_s9 }
   0x5   :  { %2013 = sst [smem:[#allocation32_spill]] %s1985_s10 }
   0x6   :  { %2014 = sst [smem:[#allocation33_spill]] %s1986_s11 }
   0x7   :  { %17 = vsyncpa [#allocation3], 0 }
   0x8   :  { %19 = vsyncpa [#allocation3 + $0x1], 0 }
   0x9   :  { %20 = vsyncpa [#allocation6], 0 }
   0xa   :  { %22 = vsyncpa [#allocation6 + $0x1], 0 }
   0xb   :  { %23 = vsyncpa [#allocation9], 0 }
   0xc   :  { %24 = vsyncpa [#allocation12], 0 }
   0xd   :  { %25 = vsyncpa [#allocation4], 0 }
   0xe   :  { %27 = vsyncpa [#allocation4 + $0x1], 0 }
   0xf   :  { %28 = vsyncpa [#allocation15], 0 }
  0x10   :  { %30 = vsyncpa [#allocation15 + $0x1], 0  ;;  %s1601_s17 = smov 0   ;;  %s1603_s18 = smov 0  }
  0x11   :  { %s1605_s19 = smov 0   ;;  %s1607_s20 = smov 0  }
  0x12 LB: > { %2015 = sst [smem:[#allocation23_spill]] %s1514_s17  ;;  %s1622_s21 = sadd.s32 4294967295, %s1526_s20   ;;  %s1526_s20 = sphi %s1607_s20, %s2052_s20   ;;  %s1522_s19 = sphi %s1605_s19, %s2056_s19   ;;  %s1518_s18 = sphi %s1603_s18, %s2055_s18   ;;  %s1514_s17 = sphi %s1601_s17, %s2054_s17  }
  0x13   : > { %2016 = sst [smem:[#allocation24_spill]] %s1526_s20  ;;  %s1987_s22 = sadd.s32 4294967294, %s1526_s20  }
  0x14   : > { %p56_p0 = scmp.ne.s32.totalorder %s1518_s18, %s1514_s17  ;;  %p2000_p1 = scmp.eq.s32.totalorder %s1622_s21, 0 }
  0x15   : > { %p258_p2 = scmp.eq.s32.totalorder %s1622_s21, 1  ;;  %p264_p3 = scmp.eq.s32.totalorder %s1987_s22, 1 }
  0x16   : > { %p1633_p4 = por %p2000_p1, %p56_p0  ;;  %p1048_p5 = scmp.ge.s32.totalorder %s1526_s20, 1 }
  0x17   : > { %p1638_p6 = por %p264_p3, %p56_p0  ;;  %p323_p7 = scmp.lt.s32.totalorder %s1526_s20, 3 }
  0x18   : > { %s2017_s23 = scalar_select %p1633_p4, 1, 0 }
  0x19   : > { %s2018_s24 = scalar_select %p1638_p6, 1, 0 }
  0x1a   : > { %p1643_p8 = pnand %p1048_p5, %p323_p7  ;;  %s1528_s26 = smov [#allocation8]  }
  0x1b   : > { %2019 = sst [smem:[#allocation25_spill]] %s2018_s24  ;;  %s335_s27 = sshll.u32 %s1528_s26, 4  ;;  %s336_s27 = int_to_ptr.vmem [resolvable:$true] %s335_s27 }
  0x1c   : > { %s2020_s25 = scalar_select %p1643_p8, 1, 0 }
  0x1d   : > { %p1155_p9 = pneg %p1643_p8  ;;  %s1657_s29 = sadd.s32 1, %s1526_s20  }
  0x1e   : > { %2022 = sst [smem:[#allocation26_spill]] %s1657_s29  ;;  %s43_s30 = sadd.s32 1, %s1522_s19 }
  0x1f   : > { %p1652_p11 = pnand %p1155_p9, %p2000_p1  ;;  %s40_s12 = ssub.s32 %s1526_s20, %s1657_s29 }
  0x20   : > { %s1243_s13 = scalar_lea.vmem %s336_s27, 512  ;;  %p1251_p5 = scmp.lt.s32.totalorder %s336_s27, %s336_s27 }
  0x21   : > { %s2021_s28 = scalar_select %p1652_p11, 1, 0 }
  0x22   : > { %p2001_p12 = pneg %p1652_p11  ;;  %p1244_p13 = scmp.ne.s32.totalorder %s336_s27, %s1243_s13 }
  0x23   : > { %p1252_p7 = scmp.lt.s32.totalorder %s1243_s13, %s1243_s13 }
  0x24   : > { %p1246_p0 = pnand %p1244_p13, %p2001_p12 }
  0x25   : > { %p1253_p9 = por %p1252_p7, %p1251_p5 }
  0x26   : > { %p1247_p3 = pneg %p1246_p0 }
  0x28   : > { %p1254_p10 = pnand %p1253_p9, %p1247_p3 }
  0x2a   : > { %1257 = shalt.err (!%p1254_p10)
}
  0x2b   : > { %s1992_s14 = smov 128   ;;  %s1994_s15 = smov 8  }
  0x2c   : > { %s2023_s3 = sld [smem:[#allocation29_spill]]  ;;  %p41_p10 = scmp.eq.s32.totalorder %s40_s12, 0 }
  0x2d   : > { %p50_p13 = scmp.ne.s32.totalorder %s1522_s19, %s1518_s18  ;;  %p51_p0 = scmp.eq.s32.totalorder %s1526_s20, 0 }
  0x2e   : > { %p1188_p3 = scmp.lt.s32.totalorder %s1526_s20, 2  ;;  %s1996_s29 = sand.u32 1, %s1522_s19  }
  0x2f   : > { %s1680_s13 = scalar_select %p41_p10, %s1522_s19, %s43_s30  }
  0x30   : > { %p52_p5 = por %p51_p0, %p50_p13  ;;  %p1684_p7 = por %p258_p2, %p50_p13 }
  0x31   : > { %2024 = sst [smem:[#allocation27_spill]] %s1680_s13  ;;  %s1690_s24 = sshll.u32 %s1526_s20, 7 }
  0x32   : > { %1158 = dma.hbm_to_vmem [thread:$0]  (!%p1652_p11), %s2023_s3, 512, %s336_s27, [#allocation9], %s1992_s14, %s1992_s14, %s1994_s15  }
  0x33   : > { %s2025_s22 = scalar_select %p1684_p7, 1, 0 }
  0x34   : > { %s1694_s17 = sshll.u32 %s1996_s29, 3  ;;  %p1696_p9 = pnand %p1188_p3, %p52_p5 }
  0x35   : > { %s402_s30 = sand.u32 1, %s1526_s20   ;;  %s2027_s1 = sld [smem:[#allocation28_spill]] }
  0x36   : > { %s406_s14 = scalar_lea.vmem [#allocation5], %s1694_s17  ;;  %s1708_s29 = scalar_lea.sflag [#allocation6], %s402_s30 }
  0x37   : > { %s413_s15 = sshll.u32 %s406_s14, 4  ;;  %p1714_p10 = pneg %p1696_p9  ;;  %s414_s15 = int_to_ptr.vmem [resolvable:$true] %s413_s15 }
  0x3b   : > { %s1705_s26 = scalar_lea.hbm %s2027_s1, %s1690_s24  ;;  %s1263_s20 = scalar_lea.hbm %s2027_s1, 256 }
  0x3c   : > { %s1258_s3 = scalar_lea.hbm %s1705_s26, 128  ;;  %p1264_p3 = scmp.lt.s32.totalorder %s1705_s26, %s2027_s1 }
  0x3d   : > { %p1259_p2 = scmp.ne.s32.totalorder %s1705_s26, %s1258_s3  ;;  %p1265_p5 = scmp.lt.s32.totalorder %s1263_s20, %s1258_s3 }
  0x3f   : > { %p1261_p13 = pnand %p1714_p10, %p1259_p2  ;;  %p1266_p1 = por %p1265_p5, %p1264_p3 }
  0x41   : > { %p1262_p0 = pneg %p1261_p13 }
  0x43   : > { %p1267_p12 = pnand %p1266_p1, %p1262_p0 }
  0x45   : > { %1270 = shalt.err (!%p1267_p12)
}
  0x46   : > { %s1271_s30 = scalar_lea.vmem %s414_s15, 128  ;;  %s1531_s8 = smov [#allocation5]  }
  0x47   : > { %p1272_p6 = scmp.ne.s32.totalorder %s414_s15, %s1271_s30  ;;  %s1276_s10 = sshll.u32 %s1531_s8, 4  ;;  %s1277_s10 = int_to_ptr.vmem [resolvable:$false] %s1276_s10 }
  0x48   : > { %s1278_s9 = scalar_lea.vmem %s1277_s10, 256  ;;  %p1279_p2 = scmp.lt.s32.totalorder %s414_s15, %s1277_s10 }
  0x49   : > { %p1274_p7 = pnand %p1272_p6, %p1714_p10  ;;  %p1280_p13 = scmp.lt.s32.totalorder %s1278_s9, %s1271_s30 }
  0x4b   : > { %p1275_p4 = pneg %p1274_p7  ;;  %p1281_p8 = por %p1280_p13, %p1279_p2 }
  0x4d   : > { %p1282_p11 = pnand %p1281_p8, %p1275_p4 }
  0x4f   : > { %1285 = shalt.err (!%p1282_p11)
}
  0x50   : > { %1171 = dma.hbm_to_vmem [thread:$0]  (!%p1696_p9), %s1705_s26, 128, %s414_s15, %s1708_s29  }
  0x51   : > { %s1532_s3 = smov [#allocation10]   ;;  %s1533_s20 = smov [#allocation11]  }
  0x52   : > { %s351_s11 = sshll.u32 %s1532_s3, 4  ;;  %s367_s12 = sshll.u32 %s1533_s20, 4  ;;  %s352_s11 = int_to_ptr.vmem [resolvable:$true] %s351_s11  ;;  %s368_s12 = int_to_ptr.vmem [resolvable:$true] %s367_s12 }
  0x53   : > { %s1297_s16 = scalar_lea.vmem %s352_s11, 512  ;;  %p2029_p6 = scmp.ne.s32.totalorder %s2021_s28, 0 }
  0x54   : > { %p1298_p1 = scmp.ne.s32.totalorder %s352_s11, %s1297_s16  ;;  %p1305_p3 = scmp.lt.s32.totalorder %s352_s11, %s352_s11 }
  0x55   : > { %p2030_p12 = pneg %p2029_p6  ;;  %p1306_p4 = scmp.lt.s32.totalorder %s1297_s16, %s1297_s16 }
  0x57   : > { %p1300_p7 = pnand %p1298_p1, %p2030_p12  ;;  %p1307_p8 = por %p1306_p4, %p1305_p3 }
  0x59   : > { %p1301_p0 = pneg %p1300_p7 }
  0x5b   : > { %p1308_p11 = pnand %p1307_p8, %p1301_p0 }
  0x5d   : > { %1311 = shalt.err (!%p1308_p11)
}
  0x5e   : > { %s2031_s8 = smov 8   ;;  %s2032_s9 = smov 128  }
  0x5f   : > { %1161 = dma.hbm_to_vmem [thread:$0]  (!%p2029_p6), %s1980_s5, 512, %s352_s11, [#allocation9], %s2032_s9, %s2032_s9, %s2031_s8  }
  0x60   : > { %s1323_s26 = scalar_lea.vmem %s368_s12, 512  ;;  %p2033_p2 = pmov %p2030_p12 }
  0x61   : > { %p1324_p5 = scmp.ne.s32.totalorder %s368_s12, %s1323_s26  ;;  %p1331_p12 = scmp.lt.s32.totalorder %s368_s12, %s368_s12 }
  0x62   : > { %p1332_p7 = scmp.lt.s32.totalorder %s1323_s26, %s1323_s26 }
  0x63   : > { %p1326_p13 = pnand %p1324_p5, %p2033_p2 }
  0x64   : > { %p1333_p0 = por %p1332_p7, %p1331_p12 }
  0x65   : > { %p1327_p1 = pneg %p1326_p13 }
  0x67   : > { %p1334_p3 = pnand %p1333_p0, %p1327_p1 }
  0x69   : > { %1337 = shalt.err (!%p1334_p3)
}
  0x6a   : > { %1164 = dma.hbm_to_vmem [thread:$0]  (!%p2029_p6), %s1982_s7, 512, %s368_s12, [#allocation12], %s2032_s9, %s2032_s9, %s2031_s8  }
  0x6b   : > { %s1759_s20 = scalar_lea.hbm %s1975_s0, %s1690_s24  ;;  %s388_s28 = scalar_lea.vmem [#allocation2], %s1694_s17 }
  0x6c   : > { %s395_s16 = sshll.u32 %s388_s28, 4  ;;  %s1766_s26 = scalar_lea.hbm %s1977_s2, %s1690_s24  ;;  %s396_s16 = int_to_ptr.vmem [resolvable:$true] %s395_s16 }
  0x6d   : > { %s2034_s14 = sand.u32 1, %s1522_s19   ;;  %s1338_s1 = scalar_lea.hbm %s1759_s20, 128 }
  0x6e   : > { %s385_s30 = scalar_lea.sflag [#allocation3], %s2034_s14  ;;  %p1339_p6 = scmp.ne.s32.totalorder %s1759_s20, %s1338_s1 }
  0x6f   : > { %s1343_s9 = scalar_lea.hbm %s1975_s0, 256  ;;  %p1344_p11 = scmp.lt.s32.totalorder %s1759_s20, %s1975_s0 }
  0x70   : > { %p1341_p4 = pnand %p1339_p6, %p1714_p10  ;;  %p1345_p5 = scmp.lt.s32.totalorder %s1343_s9, %s1338_s1 }
  0x72   : > { %p1342_p8 = pneg %p1341_p4  ;;  %p1346_p2 = por %p1345_p5, %p1344_p11 }
  0x74   : > { %p1347_p13 = pnand %p1346_p2, %p1342_p8 }
  0x76   : > { %1350 = shalt.err (!%p1347_p13)
}
  0x77   : > { %s1351_s24 = scalar_lea.vmem %s396_s16, 128  ;;  %s1534_s28 = smov [#allocation2]  }
  0x78   : > { %p1352_p1 = scmp.ne.s32.totalorder %s396_s16, %s1351_s24  ;;  %s1356_s10 = sshll.u32 %s1534_s28, 4  ;;  %s1357_s10 = int_to_ptr.vmem [resolvable:$false] %s1356_s10 }
  0x79   : > { %s1358_s15 = scalar_lea.vmem %s1357_s10, 256  ;;  %p1359_p0 = scmp.lt.s32.totalorder %s396_s16, %s1357_s10 }
  0x7a   : > { %p1354_p12 = pnand %p1352_p1, %p1714_p10  ;;  %p1360_p3 = scmp.lt.s32.totalorder %s1358_s15, %s1351_s24 }
  0x7c   : > { %p1355_p7 = pneg %p1354_p12  ;;  %p1361_p6 = por %p1360_p3, %p1359_p0 }
  0x7e   : > { %p1362_p4 = pnand %p1361_p6, %p1355_p7 }
  0x80   : > { %1365 = shalt.err (!%p1362_p4)
}
  0x81   : > { %1168 = dma.hbm_to_vmem [thread:$0]  (!%p1696_p9), %s1759_s20, 128, %s396_s16, %s385_s30  }
  0x82   : > { %s424_s1 = scalar_lea.vmem [#allocation7], %s1694_s17  ;;  %s1366_s12 = scalar_lea.hbm %s1766_s26, 128 }
  0x83   : > { %s431_s14 = sshll.u32 %s424_s1, 4  ;;  %p1367_p8 = scmp.ne.s32.totalorder %s1766_s26, %s1366_s12  ;;  %s432_s14 = int_to_ptr.vmem [resolvable:$true] %s431_s14 }
  0x84   : > { %s1371_s3 = scalar_lea.hbm %s1977_s2, 256  ;;  %p1372_p2 = scmp.lt.s32.totalorder %s1766_s26, %s1977_s2 }
  0x85   : > { %p1369_p11 = pnand %p1367_p8, %p1714_p10  ;;  %p1373_p13 = scmp.lt.s32.totalorder %s1371_s3, %s1366_s12 }
  0x87   : > { %p1370_p5 = pneg %p1369_p11  ;;  %p1374_p1 = por %p1373_p13, %p1372_p2 }
  0x89   : > { %p1375_p12 = pnand %p1374_p1, %p1370_p5 }
  0x8b   : > { %1378 = shalt.err (!%p1375_p12)
}
  0x8c   : > { %s1379_s17 = scalar_lea.vmem %s432_s14, 128  ;;  %s1535_s20 = smov [#allocation7]  }
  0x8d   : > { %p1380_p7 = scmp.ne.s32.totalorder %s432_s14, %s1379_s17  ;;  %s1384_s16 = sshll.u32 %s1535_s20, 4  ;;  %s1385_s16 = int_to_ptr.vmem [resolvable:$false] %s1384_s16 }
  0x8e   : > { %s1386_s30 = scalar_lea.vmem %s1385_s16, 256  ;;  %p1387_p6 = scmp.lt.s32.totalorder %s432_s14, %s1385_s16 }
  0x8f   : > { %p1382_p0 = pnand %p1380_p7, %p1714_p10  ;;  %p1388_p4 = scmp.lt.s32.totalorder %s1386_s30, %s1379_s17 }
  0x91   : > { %p1383_p3 = pneg %p1382_p0  ;;  %p1389_p8 = por %p1388_p4, %p1387_p6 }
  0x93   : > { %p1390_p11 = pnand %p1389_p8, %p1383_p3 }
  0x95   : > { %1393 = shalt.err (!%p1390_p11)
}
  0x96   : > { %1174 = dma.hbm_to_vmem [thread:$0]  (!%p1696_p9), %s1766_s26, 128, %s432_s14, %s1708_s29  }
  0x97   : > { %p2035_p5 = scmp.ne.s32.totalorder %s2020_s25, 0 }
  0x98   : > { %s1807_s13 = sand.u32 (!%p2035_p5), 1, %s1518_s18   ;;  %p2036_p10 = scmp.ne.s32.totalorder (!%p2035_p5), %s2017_s23, 0 }
  0x99   : > { %440 = sbr.rel (%p2035_p5) target bundleno = 432 (0x1b0), region = 56  ;;  %s1810_s28 = sshll.u32 (!%p2035_p5), %s1807_s13, 3 }
  0x9a   : > { %s443_s10 = scalar_lea.sflag (!%p2035_p5), [#allocation3], %s1807_s13  ;;  %s446_s15 = scalar_lea.vmem (!%p2035_p5), [#allocation2], %s1810_s28 }
  0x9e   : > { %1489 = dma.done.wait (%p2036_p10), %s443_s10, 128  }
  0x9f   : > { %1491 = vsyncadd (%p2036_p10), %s443_s10, 4294967168  ;;  %s451_s25 = sand.u32 1, %s1622_s21   ;;  %s455_s27 = scalar_lea.vmem [#allocation5], %s1810_s28 }
  0xa0   : > { %s452_s29 = scalar_lea.sflag [#allocation6], %s451_s25 }
  0xa1   : > { %1493 = dma.done.wait (%p2036_p10), %s452_s29, 256  }
  0xa2   : > { %1495 = vsyncadd (%p2036_p10), %s452_s29, 4294967040  ;;  %s464_s26 = scalar_lea.vmem [#allocation7], %s1810_s28  ;;  %p2037_p9 = scmp.eq.s32.totalorder %s1622_s21, 0 }
  0xa4   : > { %1497 = dma.done.wait (%p2037_p9), [#allocation9], 1024   ;;  %p2038_p2 = pmov %p2037_p9 }
  0xa6   : > { %1499 = vsyncadd (%p2038_p2), [#allocation9], 4294966272  ;;  %p2039_p13 = pmov %p2038_p2 }
  0xa7   : > { %p2040_p1 = pmov %p2038_p2 }
  0xa8   : > { %1501 = dma.done.wait (%p2039_p13), [#allocation12], 512  }
  0xa9   : > { %1503 = vsyncadd (%p2040_p1), [#allocation12], 4294966784  ;;  %v1536_v0 = vmov 0.0   ;;  %vm1537_vm0 = vmmov 0   ;;  %v539_v1 = vld [vmem:[#allocation8 + $0x18] sm:$0xff]  ;;  %v538_v2 = vld [vmem:[#allocation8 + $0x10] sm:$0xff] }
  0xaa   : > { %1098 = vmatprep.subr.mxu0 %v1536_v0  ;;  %1109 = vmatprep.subr.mxu1 %v1536_v0  ;;  %v544_v3 = vld [vmem:[#allocation10 + $0x18] sm:$0xff]  ;;  %v537_v4 = vld [vmem:[#allocation8 + $0x8] sm:$0xff]  ;;  %v543_v5 = vld [vmem:[#allocation10 + $0x10] sm:$0xff]  ;;  %vm557_vm1 = vcmask 261120   ;;  %s1851_s14 = sshll.u32 %s1622_s21, 7  ;;  %s520_s12 = scalar_lea.vmem [#allocation13], %s1810_s28 }
  0xab   : > { %1106 = vmatprep.mubr.msk.f32.mxu0 %vm1537_vm0, %v1536_v0  ;;  %1117 = vmatprep.mubr.msk.f32.mxu1 %vm1537_vm0, %v1536_v0  ;;  %v542_v6 = vld [vmem:[#allocation10 + $0x8] sm:$0xff]  ;;  %v536_v7 = vld [vmem:[#allocation8] sm:$0xff]  ;;  %v535_v8 = vld [vmem:[%s446_s15] sm:$0xff]  ;;  %s818_s8 = sshll.u32 %s520_s12, 4  ;;  %s527_s11 = scalar_lea.vmem [#allocation14], %s1810_s28  ;;  %s1866_s8 = int_to_ptr.vmem [resolvable:$true] %s818_s8 }
  0xac   : > { %1099 = vmatpush3.msra.mxu0 %v539_v1  ;;  %1110 = vmatpush3.msra.mxu1 %v544_v3  ;;  %v549_v9 = vld [vmem:[#allocation11 + $0x18] sm:$0xff]  ;;  %v541_v10 = vld [vmem:[#allocation10] sm:$0xff]  ;;  %v548_v12 = vld [vmem:[#allocation11 + $0x10] sm:$0xff]  ;;  %s831_s24 = sshll.u32 %s527_s11, 4  ;;  %s2041_s16 = sld [smem:[#allocation31_spill]]  ;;  %s1874_s24 = int_to_ptr.vmem [resolvable:$true] %s831_s24 }
  0xad   : > { %1100 = vmatprep.subr.mxu0 %v1536_v0  ;;  %1111 = vmatprep.subr.mxu1 %v1536_v0  ;;  %v540_v11 = vld [vmem:[%s455_s27] sm:$0xff]  ;;  %v545_v15 = vld [vmem:[%s464_s26] sm:$0xff]  ;;  %s2042_s29 = sld [smem:[#allocation32_spill]]  ;;  %s795_s26 = scalar_lea.sflag [#allocation4], %s1807_s13 }
  0xae   : > { %1101 = vmatpush3.msra.mxu0 %v538_v2  ;;  %1112 = vmatpush3.msra.mxu1 %v543_v5  ;;  %v547_v13 = vld [vmem:[#allocation11 + $0x8] sm:$0xff]  ;;  %v546_v14 = vld [vmem:[#allocation11] sm:$0xff]  ;;  %v1069_v16 = vld [vmem:[%s1979_s4] ss:$0 sm:$0xff]  ;;  %s1394_s23 = scalar_lea.vmem %s1866_s8, 128  ;;  %p2043_p7 = scmp.ne.s32.totalorder %s2025_s22, 0 }
  0xaf   : > { %1102 = vmatprep.subr.mxu0 %v1536_v0  ;;  %1113 = vmatprep.subr.mxu1 %v1536_v0  ;;  %v1071_v18 = vld [vmem:[%s1981_s6] ss:$0 sm:$0xff]  ;;  %p1395_p12 = scmp.ne.s32.totalorder %s1866_s8, %s1394_s23  ;;  %s1538_s1 = smov [#allocation13]  }
  0xb0   : > { %1103 = vmatpush3.msra.mxu0 %v537_v4  ;;  %1114 = vmatpush3.msra.mxu1 %v542_v6  ;;  %s1398_s9 = sshll.u32 %s1538_s1, 4  ;;  %s1399_s9 = int_to_ptr.vmem [resolvable:$false] %s1398_s9 }
  0xb1   : > { %1104 = vmatprep.subr.mxu0 %v1536_v0  ;;  %1115 = vmatprep.subr.mxu1 %v1536_v0  ;;  %p1396_p0 = pnand %p1395_p12, %p2043_p7  ;;  %s1400_s3 = scalar_lea.vmem %s1399_s9, 256 }
  0xb2   : > { %1105 = vmatpush3.msra.mxu0 %v536_v7  ;;  %1116 = vmatpush3.msra.mxu1 %v541_v10  ;;  %s1864_s30 = scalar_lea.hbm %s2041_s16, %s1851_s14  ;;  %p1401_p6 = scmp.lt.s32.totalorder %s1866_s8, %s1399_s9 }
  0xb3   : > { %1107 = vmatmul.mubr.msk.f32.vlgmr.msra.gmra.mxu0 %vm557_vm1, %v535_v8  ;;  %1120 = vmatprep.subr.mxu0 %v1536_v0  ;;  %s1872_s27 = scalar_lea.hbm %s2042_s29, %s1851_s14  ;;  %p1397_p3 = pneg %p1396_p0 }
  0xb4   : > { %1121 = vmatpush3.msra.mxu0 %v549_v9  ;;  %1118 = vmatmul.mubr.msk.f32.vlgmr.msra.gmra.mxu1 %vm557_vm1, %v540_v11  ;;  %p1402_p4 = scmp.lt.s32.totalorder %s1400_s3, %s1394_s23 }
  0xb5   : > { %1122 = vmatprep.subr.mxu0 %v1536_v0  ;;  %1128 = vmatprep.mubr.msk.f32.mxu0 %vm1537_vm0, %v1536_v0 }
  0xb6   : > { %1123 = vmatpush3.msra.mxu0 %v548_v12  ;;  %p1403_p8 = por %p1402_p4, %p1401_p6 }
  0xb7   : > { %1124 = vmatprep.subr.mxu0 %v1536_v0 }
  0xb8   : > { %1125 = vmatpush3.msra.mxu0 %v547_v13  ;;  %p1404_p11 = pnand %p1403_p8, %p1397_p3 }
  0xb9   : > { %1126 = vmatprep.subr.mxu0 %v1536_v0 }
  0xba   : > { %1127 = vmatpush3.msra.mxu0 %v546_v14 }
  0xbb   : > { %1129 = vmatmul.mubr.msk.f32.vlgmr.msra.gmra.mxu0 %vm557_vm1, %v545_v15 }
 0x173   : > { %v627_v17 = vpop.f32.mrf.mxu0 }
 0x174   : > { %v628_v19 = vadd.f32 %v1069_v16, %v627_v17  ;;  %v708_v21 = vpop.f32.mrf.mxu1 }
 0x175   : > { %v1108_v20 = vpop.f32.mrf.mxu0  ;;  %v709_v22 = vadd.f32 %v1071_v18, %v708_v21 }
 0x176   : > { %631 = vst.msk [vmem:[%s520_s12] sm:$0xff] %vm557_vm1, %v628_v19  ;;  %v1119_v23 = vpop.f32.mrf.mxu1 }
 0x177   : > { %1407 = shalt.err (!%p1404_p11)
}
 0x178   : > { %s1408_s12 = scalar_lea.hbm %s1864_s30, 128  ;;  %s1412_s20 = scalar_lea.hbm %s2041_s16, 256 }
 0x179   : > { %p1409_p5 = scmp.ne.s32.totalorder %s1864_s30, %s1408_s12  ;;  %p1413_p2 = scmp.lt.s32.totalorder %s1864_s30, %s2041_s16 }
 0x17a   : > { %p1414_p13 = scmp.lt.s32.totalorder %s1412_s20, %s1408_s12 }
 0x17b   : > { %p1410_p10 = pnand %p1409_p5, %p2043_p7 }
 0x17c   : > { %p1415_p1 = por %p1414_p13, %p1413_p2 }
 0x17d   : > { %p1411_p9 = pneg %p1410_p10 }
 0x17f   : > { %p1416_p12 = pnand %p1415_p1, %p1411_p9 }
 0x181   : > { %1419 = shalt.err (!%p1416_p12)
}
 0x182   : > { %1149 = dma.vmem_to_hbm [thread:$0]  (%p2043_p7), %s1866_s8, 128, %s1864_s30, %s795_s26   ;;  %712 = vst.msk [vmem:[%s527_s11] sm:$0xff] %vm557_vm1, %v709_v22 }
 0x183   : > { %s534_s23 = scalar_lea.vmem [#allocation16], %s1810_s28  ;;  %s2044_s12 = sld [smem:[#allocation30_spill]] }
 0x184   : > { %s1904_s1 = sshll.u32 %s534_s23, 4  ;;  %s1911_s13 = scalar_lea.sflag [#allocation15], %s451_s25  ;;  %s845_s1 = int_to_ptr.vmem [resolvable:$true] %s1904_s1 }
 0x185   : > { %s1420_s17 = scalar_lea.vmem %s1874_s24, 128  ;;  %s1539_s8 = smov [#allocation14]  }
 0x186   : > { %p1421_p0 = scmp.ne.s32.totalorder %s1874_s24, %s1420_s17  ;;  %s1424_s30 = sshll.u32 %s1539_s8, 4  ;;  %s1425_s30 = int_to_ptr.vmem [resolvable:$false] %s1424_s30 }
 0x187   : > { %s1426_s11 = scalar_lea.vmem %s1425_s30, 256  ;;  %p1427_p4 = scmp.lt.s32.totalorder %s1874_s24, %s1425_s30 }
 0x188   : > { %p1422_p3 = pnand %p1421_p0, %p2043_p7  ;;  %p1428_p8 = scmp.lt.s32.totalorder %s1426_s11, %s1420_s17 }
 0x189   : > { %v1073_v24 = vld [vmem:[%s2044_s12] ss:$0 sm:$0xff] }
 0x18a   : > { %p1423_p6 = pneg %p1422_p3  ;;  %p1429_p11 = por %p1428_p8, %p1427_p4 }
 0x18c   : > { %p1430_p5 = pnand %p1429_p11, %p1423_p6 }
 0x18e   : > { %1433 = shalt.err (!%p1430_p5)
}
 0x18f   : > { %s1434_s21 = scalar_lea.hbm %s1872_s27, 128  ;;  %s1438_s20 = scalar_lea.hbm %s2042_s29, 256 }
 0x190   : > { %p1435_p10 = scmp.ne.s32.totalorder %s1872_s27, %s1434_s21  ;;  %p1439_p13 = scmp.lt.s32.totalorder %s1872_s27, %s2042_s29 }
 0x191   : > { %p1440_p1 = scmp.lt.s32.totalorder %s1438_s20, %s1434_s21 }
 0x192   : > { %p1436_p9 = pnand %p1435_p10, %p2043_p7 }
 0x193   : > { %p1441_p12 = por %p1440_p1, %p1439_p13 }
 0x194   : > { %p1437_p2 = pneg %p1436_p9 }
 0x196   : > { %p1442_p0 = pnand %p1441_p12, %p1437_p2 }
 0x198   : > { %1445 = shalt.err (!%p1442_p0)
}
 0x199   : > { %1150 = dma.vmem_to_hbm [thread:$0]  (%p2043_p7), %s1874_s24, 128, %s1872_s27, %s1911_s13   ;;  %v789_v25 = vpop.f32.mrf.mxu0 }
 0x19a   : > { %v790_v26 = vadd.f32 %v1073_v24, %v789_v25  ;;  %s2045_s12 = sld [smem:[#allocation33_spill]]  ;;  %s1446_s8 = scalar_lea.vmem %s845_s1, 128 }
 0x19b   : > { %v1130_v27 = vpop.f32.mrf.mxu0  ;;  %p1447_p3 = scmp.ne.s32.totalorder %s845_s1, %s1446_s8  ;;  %s1540_s30 = smov [#allocation16]  }
 0x19c   : > { %793 = vst.msk [vmem:[%s534_s23] sm:$0xff] %vm557_vm1, %v790_v26  ;;  %s1450_s11 = sshll.u32 %s1540_s30, 4  ;;  %s1451_s11 = int_to_ptr.vmem [resolvable:$false] %s1450_s11 }
 0x19d   : > { %p1448_p6 = pnand %p1447_p3, %p2043_p7  ;;  %s1452_s24 = scalar_lea.vmem %s1451_s11, 256 }
 0x19e   : > { %p1453_p8 = scmp.lt.s32.totalorder %s845_s1, %s1451_s11  ;;  %p1454_p11 = scmp.lt.s32.totalorder %s1452_s24, %s1446_s8 }
 0x19f   : > { %p1449_p4 = pneg %p1448_p6 }
 0x1a0   : > { %s842_s17 = scalar_lea.hbm %s2045_s12, %s1851_s14  ;;  %p1455_p5 = por %p1454_p11, %p1453_p8 }
 0x1a2   : > { %p1456_p10 = pnand %p1455_p5, %p1449_p4 }
 0x1a4   : > { %1459 = shalt.err (!%p1456_p10)
}
 0x1a5   : > { %s1460_s14 = scalar_lea.hbm %s842_s17, 128  ;;  %s1464_s23 = scalar_lea.hbm %s2045_s12, 256 }
 0x1a6   : > { %p1461_p9 = scmp.ne.s32.totalorder %s842_s17, %s1460_s14  ;;  %p1465_p1 = scmp.lt.s32.totalorder %s842_s17, %s2045_s12 }
 0x1a7   : > { %p1466_p12 = scmp.lt.s32.totalorder %s1464_s23, %s1460_s14 }
 0x1a8   : > { %p1462_p2 = pnand %p1461_p9, %p2043_p7 }
 0x1a9   : > { %p1467_p0 = por %p1466_p12, %p1465_p1 }
 0x1aa   : > { %p1463_p13 = pneg %p1462_p2 }
 0x1ac   : > { %p1468_p3 = pnand %p1467_p0, %p1463_p13 }
 0x1ae   : > { %1471 = shalt.err (!%p1468_p3)
}
 0x1af   : > { %1151 = dma.vmem_to_hbm [thread:$0]  (%p2043_p7), %s845_s1, 128, %s842_s17, %s1911_s13  }
 0x1b0 PF: > { %s2046_s26 = sld [smem:[#allocation23_spill]] }
 0x1b1   : > { %s2047_s20 = sld [smem:[#allocation25_spill]] }
 0x1b2   : > { %s2048_s10 = sld [smem:[#allocation24_spill]] }
 0x1b6   : > { %s856_s15 = sand.u32 1, %s2046_s26  }
 0x1b7   : > { %p2049_p6 = scmp.ne.s32.totalorder %s2047_s20, 0  ;;  %s857_s9 = scalar_lea.sflag [#allocation4], %s856_s15 }
 0x1b8   : > { %p2050_p4 = scmp.ge.s32.totalorder %s2048_s10, 2 }
 0x1ba   : > { %p1176_p8 = pnand %p2050_p4, %p2049_p6 }
 0x1bc   : > { %p1177_p11 = pneg %p1176_p8 }
 0x1be   : > { %1505 = dma.done.wait (%p1177_p11), %s857_s9, 128  }
 0x1bf   : > { %1507 = vsyncadd (%p1177_p11), %s857_s9, 4294967168  ;;  %s2051_s3 = sadd.s32 4294967294, %s2048_s10  }
 0x1c0   : > { %s865_s8 = sand.u32 1, %s2051_s3  }
 0x1c1   : > { %s866_s30 = scalar_lea.sflag [#allocation15], %s865_s8 }
 0x1c2   : > { %1509 = dma.done.wait (%p1177_p11), %s866_s30, 256  }
 0x1c3   : > { %1511 = vsyncadd (%p1177_p11), %s866_s30, 4294967040  ;;  %s2052_s20 = sld [smem:[#allocation26_spill]]  ;;  %s2054_s17 = smov %s1518_s18 }
 0x1c4   : > { %s2053_s22 = sld [smem:[#allocation27_spill]]  ;;  %s2055_s18 = smov %s1522_s19 }
 0x1c9   : > { %p33_p7 = scmp.ge.s32.totalorder %s2052_s20, 4  }
 0x1ca   : > { %s2056_s19 = smov %s2053_s22 }
 0x1cb   :  { %35 = sbr.rel (!%p33_p7) target bundleno = 18 (0x12), region = 169 }
 0x1d0   :  { %880 = vsyncpa [#allocation3], 1 }
 0x1d1   :  { %882 = vsyncpa [#allocation3 + $0x1], 1 }
 0x1d2   :  { %883 = vsyncpa [#allocation6], 1 }
 0x1d3   :  { %885 = vsyncpa [#allocation6 + $0x1], 1 }
 0x1d4   :  { %886 = vsyncpa [#allocation9], 1 }
 0x1d5   :  { %887 = vsyncpa [#allocation12], 1 }
 0x1d6   :  { %888 = vsyncpa [#allocation4], 1 }
 0x1d7   :  { %890 = vsyncpa [#allocation4 + $0x1], 1 }
 0x1d8   :  { %891 = vsyncpa [#allocation15], 1 }
 0x1d9   :  { %893 = vsyncpa [#allocation15 + $0x1], 1 }

</bundles_post_ra>
